<compile_context>
chip_gen: v7x
topology: tpu7x:2x2x1
jax: 0.10.0
libtpu: 0.0.40
codegen_flags: <defaults>
</compile_context>

<pallas_src>
import math

import jax
import jax.numpy as jnp
from jax.experimental import pallas as pl
from jax.experimental.pallas import tpu as pltpu


def _round_up(v, m):
    return (v + m - 1) // m * m


def _pick_tile(total, unit, cap):
    """Largest multiple of `unit` that divides `total` and is <= cap."""
    best = unit
    t = unit
    while t <= min(total, cap):
        if total % t == 0:
            best = t
        t += unit
    return best


def _mlp_head_kernel(x_ref, w1_ref, b1_ref, w2_ref, b2_ref, o_ref, acc_ref):
    """Fused MLP head with K-tiled first matmul.

    grid = (M tiles, K tiles).  acc_ref accumulates x @ W1 in f32 across the K
    axis; on the last K step the bias + ReLU + second matmul + bias are applied
    and the lane-dense output slab is written.
    """
    k = pl.program_id(1)

    @pl.when(k == 0)
    def _():
        acc_ref[...] = jnp.zeros_like(acc_ref)

    # bf16 x bf16 -> f32 accumulate on the MXU.
    acc_ref[...] += jnp.dot(x_ref[...], w1_ref[...],
                            preferred_element_type=jnp.float32)

    @pl.when(k == pl.num_programs(1) - 1)
    def _():
        # Bias + ReLU in f32 on the VPU.
        h = jnp.maximum(acc_ref[...] + b1_ref[...], 0.0)
        # Second linear: bf16 inputs, f32 accumulate.
        out = jnp.dot(h.astype(w2_ref.dtype), w2_ref[...],
                      preferred_element_type=jnp.float32)
        o_ref[...] = (out + b2_ref[...]).astype(o_ref.dtype)


def classifier_forward(x, w1, b1, w2, b2):
    """x: [batch, ...] -> Flatten -> Linear -> ReLU -> Linear. Returns [batch, out_dim].

    NOTE: w1 is [in_dim, hidden_dim], w2 is [hidden_dim, out_dim] (transposed
    vs. PyTorch nn.Linear weights). x may be any dtype; matmuls run in bf16
    with f32 accumulation.
    """
    batch = x.shape[0]
    x2d = x.reshape(batch, -1)                     # nn.Flatten()
    in_dim, hidden_dim = w1.shape
    out_dim = w2.shape[1]
    assert x2d.shape[1] == in_dim, "flattened input does not match w1"
    assert w2.shape[0] == hidden_dim
    assert b1.shape == (hidden_dim,) and b2.shape == (out_dim,)

    # ---- padded, lane-dense dimensions -------------------------------------
    k_pad = _round_up(in_dim, 128)                 # K (reduction) axis
    h_pad = _round_up(hidden_dim, 128)             # hidden axis (lane dim of W1)
    n_pad = _round_up(max(out_dim, 1), 128)        # lane-dense output slab

    # Batch (M) tiling: 128-granular once batch is large; otherwise one tile.
    if batch <= 256:
        m_pad = _round_up(batch, 8)
        tm = m_pad
    else:
        tm = 256
        m_pad = _round_up(batch, tm)

    # K tiling: 128-granular, capped so the double-buffered W1 tile stays small
    # enough for v5e's 16 MiB scoped-VMEM default.
    tk = _pick_tile(k_pad, 128, 512)

    # ---- zero-pad + cast (zero padding is exact for matmul / ReLU) ---------
    xp = jnp.zeros((m_pad, k_pad), jnp.bfloat16)
    xp = xp.at[:batch, :in_dim].set(x2d.astype(jnp.bfloat16))
    w1p = jnp.zeros((k_pad, h_pad), jnp.bfloat16)
    w1p = w1p.at[:in_dim, :hidden_dim].set(w1.astype(jnp.bfloat16))
    b1p = jnp.zeros((1, h_pad), jnp.float32)
    b1p = b1p.at[:, :hidden_dim].set(b1.astype(jnp.float32)[None, :])
    w2p = jnp.zeros((h_pad, n_pad), jnp.bfloat16)
    w2p = w2p.at[:hidden_dim, :out_dim].set(w2.astype(jnp.bfloat16))
    b2p = jnp.zeros((1, n_pad), jnp.float32)
    b2p = b2p.at[:, :out_dim].set(b2.astype(jnp.float32)[None, :])

    grid = (m_pad // tm, k_pad // tk)

    out_padded = pl.pallas_call(
        _mlp_head_kernel,
        out_shape=jax.ShapeDtypeStruct((m_pad, n_pad), jnp.float32),
        grid_spec=pltpu.PrefetchScalarGridSpec(
            num_scalar_prefetch=0,
            grid=grid,
            in_specs=[
                # x: new tile per (M, K) grid point.
                pl.BlockSpec((tm, tk), lambda i, k: (i, k)),
                # W1: constant along M -> stays VMEM-resident across batch tiles.
                pl.BlockSpec((tk, h_pad), lambda i, k: (k, 0)),
                # b1, W2, b2: fully resident.
                pl.BlockSpec((1, h_pad), lambda i, k: (0, 0)),
                pl.BlockSpec((h_pad, n_pad), lambda i, k: (0, 0)),
                pl.BlockSpec((1, n_pad), lambda i, k: (0, 0)),
            ],
            # Output block constant along K -> accumulator pattern; written once
            # on the last K step. Lane-dense (n_pad >= 128) -> unmasked stores.
            out_specs=pl.BlockSpec((tm, n_pad), lambda i, k: (i, 0)),
            scratch_shapes=[pltpu.VMEM((tm, h_pad), jnp.float32)],
        ),
        compiler_params=pltpu.CompilerParams(
            # M axis parallel (megacore / v7x 2-TC sharding), K axis is a
            # reduction so it must stay "arbitrary".
            dimension_semantics=("parallel", "arbitrary"),
        ),
    )(xp, w1p, b1p, w2p, b2p)

    return out_padded[:batch, :out_dim]


def init_params(key, in_dim, hidden_dim, out_dim):
    """Deterministic init mimicking nn.Linear default (uniform +/- 1/sqrt(fan_in))."""
    k1, k2, k3, k4 = jax.random.split(key, 4)
    bound1 = 1.0 / math.sqrt(in_dim)
    bound2 = 1.0 / math.sqrt(hidden_dim)
    w1 = jax.random.uniform(k1, (in_dim, hidden_dim), jnp.float32, -bound1, bound1)
    b1 = jax.random.uniform(k2, (hidden_dim,), jnp.float32, -bound1, bound1)
    w2 = jax.random.uniform(k3, (hidden_dim, out_dim), jnp.float32, -bound2, bound2)
    b2 = jax.random.uniform(k4, (out_dim,), jnp.float32, -bound2, bound2)
    return w1, b1, w2, b2


if __name__ == "__main__":
    # Small shapes consistent with the module: Flatten handles an NCHW input,
    # in_dim = 4*8*8 = 256, hidden_dim = 256, out_dim = 2.
    batch, channels, spatial = 8, 4, 8
    in_dim = channels * spatial * spatial
    hidden_dim, out_dim = 256, 2

    key = jax.random.PRNGKey(0)
    kx, kp = jax.random.split(key)
    x = jax.random.normal(kx, (batch, channels, spatial, spatial), jnp.float32)
    w1, b1, w2, b2 = init_params(kp, in_dim, hidden_dim, out_dim)

    out = classifier_forward(x, w1, b1, w2, b2)
    out = jax.block_until_ready(out)

    # Pure-JAX references.
    x2d = x.reshape(batch, -1)
    ref_f32 = jnp.maximum(x2d @ w1 + b1, 0.0) @ w2 + b2
    # bf16-input / f32-accumulate reference mirroring the kernel's precision.
    h_bf = jnp.dot(x2d.astype(jnp.bfloat16), w1.astype(jnp.bfloat16),
                   preferred_element_type=jnp.float32)
    h_bf = jnp.maximum(h_bf + b1, 0.0)
    ref_bf = jnp.dot(h_bf.astype(jnp.bfloat16), w2.astype(jnp.bfloat16),
                     preferred_element_type=jnp.float32) + b2

    assert out.shape == (batch, out_dim)
    assert jnp.allclose(out, ref_bf, atol=1e-3, rtol=1e-3), "mismatch vs bf16 reference"
    assert jnp.allclose(out, ref_f32, atol=5e-2, rtol=5e-2), "mismatch vs f32 reference"

    print("KERNEL_OK")
</pallas_src>

<mosaic_0001>
module attributes {stable_mosaic.version = 11 : i64} {
  func.func @_mlp_head_kernel(%arg0: i32, %arg1: i32, %arg2: memref<8x256xbf16, #tpu.memory_space<vmem>>, %arg3: memref<256x256xbf16, #tpu.memory_space<vmem>>, %arg4: memref<1x256xf32, #tpu.memory_space<vmem>>, %arg5: memref<256x128xbf16, #tpu.memory_space<vmem>>, %arg6: memref<1x128xf32, #tpu.memory_space<vmem>>, %arg7: memref<8x128xf32, #tpu.memory_space<vmem>>, %arg8: memref<8x256xf32, #tpu.memory_space<vmem>>) attributes {dimension_semantics = [#tpu.dimension_semantics<parallel>, #tpu.dimension_semantics<arbitrary>], iteration_bounds = array<i64: 1, 1>, scalar_prefetch = 0 : i64, scratch_operands = 1 : i64, tpu.core_type = #tpu.core_type<tc>, window_params = [{transform_indices = @transform_0, window_bounds = array<i64: 8, 256>}, {transform_indices = @transform_1, window_bounds = array<i64: 256, 256>}, {pipeline_mode = #tpu.pipeline_mode<synchronous>, transform_indices = @transform_2, window_bounds = array<i64: 1, 256>}, {pipeline_mode = #tpu.pipeline_mode<synchronous>, transform_indices = @transform_3, window_bounds = array<i64: 256, 128>}, {pipeline_mode = #tpu.pipeline_mode<synchronous>, transform_indices = @transform_4, window_bounds = array<i64: 1, 128>}, {transform_indices = @transform_5, window_bounds = array<i64: 8, 128>}]} {
    %c0_i32 = arith.constant 0 : i32
    %0 = arith.cmpi eq, %arg1, %c0_i32 : i32
    %1 = arith.extui %0 : i1 to i32
    %c0_i32_0 = arith.constant 0 : i32
    %2 = arith.cmpi ne, %1, %c0_i32_0 : i32
    scf.if %2 {
      %cst_10 = arith.constant 0.000000e+00 : f32
      %12 = vector.broadcast %cst_10 : f32 to vector<8x256xf32>
      %c0_11 = arith.constant 0 : index
      %c0_12 = arith.constant 0 : index
      %13 = vector.load %arg8[%c0_11, %c0_12] : memref<8x256xf32, #tpu.memory_space<vmem>>, vector<8x256xf32>
      tpu.vector_store %arg8[%c0_11, %c0_12], %12 {strides = array<i32>} : memref<8x256xf32, #tpu.memory_space<vmem>>, vector<8x256xf32>,
    } else {
    }
    %c0 = arith.constant 0 : index
    %c0_1 = arith.constant 0 : index
    %3 = vector.load %arg8[%c0, %c0_1] : memref<8x256xf32, #tpu.memory_space<vmem>>, vector<8x256xf32>
    %c0_2 = arith.constant 0 : index
    %c0_3 = arith.constant 0 : index
    %4 = vector.load %arg2[%c0_2, %c0_3] : memref<8x256xbf16, #tpu.memory_space<vmem>>, vector<8x256xbf16>
    %c0_4 = arith.constant 0 : index
    %c0_5 = arith.constant 0 : index
    %5 = vector.load %arg3[%c0_4, %c0_5] : memref<256x256xbf16, #tpu.memory_space<vmem>>, vector<256x256xbf16>
    %cst = arith.constant dense<0.000000e+00> : vector<8x256xf32>
    %6 = tpu.matmul %4, %5, %cst {dimension_numbers = #tpu.dot_dimension_numbers<[1], [0], [0], [1], [0, 0, 1, 1], [], []>} : vector<8x256xbf16>, vector<256x256xbf16>, vector<8x256xf32> -> vector<8x256xf32>
    %7 = arith.addf %3, %6 : vector<8x256xf32>
    %c0_6 = arith.constant 0 : index
    %c0_7 = arith.constant 0 : index
    %8 = vector.load %arg8[%c0_6, %c0_7] : memref<8x256xf32, #tpu.memory_space<vmem>>, vector<8x256xf32>
    tpu.vector_store %arg8[%c0_6, %c0_7], %7 {strides = array<i32>} : memref<8x256xf32, #tpu.memory_space<vmem>>, vector<8x256xf32>,
    %c0_i32_8 = arith.constant 0 : i32
    %9 = arith.cmpi eq, %arg1, %c0_i32_8 : i32
    %10 = arith.extui %9 : i1 to i32
    %c0_i32_9 = arith.constant 0 : i32
    %11 = arith.cmpi ne, %10, %c0_i32_9 : i32
    scf.if %11 {
      %c0_10 = arith.constant 0 : index
      %c0_11 = arith.constant 0 : index
      %12 = vector.load %arg8[%c0_10, %c0_11] : memref<8x256xf32, #tpu.memory_space<vmem>>, vector<8x256xf32>
      %c0_12 = arith.constant 0 : index
      %c0_13 = arith.constant 0 : index
      %13 = vector.load %arg4[%c0_12, %c0_13] : memref<1x256xf32, #tpu.memory_space<vmem>>, vector<1x256xf32>
      %14 = vector.broadcast %13 : vector<1x256xf32> to vector<8x256xf32>
      %15 = arith.addf %12, %14 : vector<8x256xf32>
      %cst_14 = arith.constant 0.000000e+00 : f32
      %16 = vector.broadcast %cst_14 : f32 to vector<8x256xf32>
      %17 = arith.maximumf %15, %16 : vector<8x256xf32>
      %18 = arith.truncf %17 : vector<8x256xf32> to vector<8x256xbf16>
      %c0_15 = arith.constant 0 : index
      %c0_16 = arith.constant 0 : index
      %19 = vector.load %arg5[%c0_15, %c0_16] : memref<256x128xbf16, #tpu.memory_space<vmem>>, vector<256x128xbf16>
      %cst_17 = arith.constant dense<0.000000e+00> : vector<8x128xf32>
      %20 = tpu.matmul %18, %19, %cst_17 {dimension_numbers = #tpu.dot_dimension_numbers<[1], [0], [0], [1], [0, 0, 1, 1], [], []>} : vector<8x256xbf16>, vector<256x128xbf16>, vector<8x128xf32> -> vector<8x128xf32>
      %c0_18 = arith.constant 0 : index
      %c0_19 = arith.constant 0 : index
      %21 = vector.load %arg6[%c0_18, %c0_19] : memref<1x128xf32, #tpu.memory_space<vmem>>, vector<1x128xf32>
      %22 = vector.broadcast %21 : vector<1x128xf32> to vector<8x128xf32>
      %23 = arith.addf %20, %22 : vector<8x128xf32>
      %c0_20 = arith.constant 0 : index
      %c0_21 = arith.constant 0 : index
      %24 = vector.load %arg7[%c0_20, %c0_21] : memref<8x128xf32, #tpu.memory_space<vmem>>, vector<8x128xf32>
      tpu.vector_store %arg7[%c0_20, %c0_21], %23 {strides = array<i32>} : memref<8x128xf32, #tpu.memory_space<vmem>>, vector<8x128xf32>,
    } else {
    }
    return
  }
  func.func @transform_0(%arg0: i32, %arg1: i32) -> (i32, i32) {
    %c0_i32 = arith.constant 0 : i32
    return %arg0, %arg1 : i32, i32
  }
  func.func @transform_1(%arg0: i32, %arg1: i32) -> (i32, i32) {
    %c0_i32 = arith.constant 0 : i32
    %c0_i32_0 = arith.constant 0 : i32
    return %arg1, %c0_i32 : i32, i32
  }
  func.func @transform_2(%arg0: i32, %arg1: i32) -> (i32, i32) {
    %c0_i32 = arith.constant 0 : i32
    %c0_i32_0 = arith.constant 0 : i32
    %c0_i32_1 = arith.constant 0 : i32
    return %c0_i32, %c0_i32_0 : i32, i32
  }
  func.func @transform_3(%arg0: i32, %arg1: i32) -> (i32, i32) {
    %c0_i32 = arith.constant 0 : i32
    %c0_i32_0 = arith.constant 0 : i32
    %c0_i32_1 = arith.constant 0 : i32
    return %c0_i32, %c0_i32_0 : i32, i32
  }
  func.func @transform_4(%arg0: i32, %arg1: i32) -> (i32, i32) {
    %c0_i32 = arith.constant 0 : i32
    %c0_i32_0 = arith.constant 0 : i32
    %c0_i32_1 = arith.constant 0 : i32
    return %c0_i32, %c0_i32_0 : i32, i32
  }
  func.func @transform_5(%arg0: i32, %arg1: i32) -> (i32, i32) {
    %c0_i32 = arith.constant 0 : i32
    %c0_i32_0 = arith.constant 0 : i32
    return %arg0, %c0_i32 : i32, i32
  }
}

</mosaic_0001>

<bundles_post_ra>
// kernel: tpu_custom_call.1
= control target key start
LH: loop header
LB: loop body
LE: loop exit
PB: predicated region body
PF: predicated region fallthrough
CT: control target
= control target key end

     0   :  { %10 = vsyncpa [#allocation4], 0  ;;  %s868_s0 = inlined_call_operand.hbm [shape: bf16[8,256], index: 0, kind: input, shape index: {}]   ;;  %s869_s1 = inlined_call_operand.hbm [shape: bf16[256,256], index: 1, kind: input, shape index: {}]   ;;  %s870_s2 = inlined_call_operand.vmem [shape: f32[1,256], index: 2, kind: input, shape index: {}]   ;;  %s871_s3 = inlined_call_operand.hbm [shape: bf16[256,128], index: 3, kind: input, shape index: {}]   ;;  %s872_s4 = inlined_call_operand.vmem [shape: f32[1,128], index: 4, kind: input, shape index: {}]   ;;  %s873_s5 = inlined_call_operand.hbm [shape: f32[8,128], index: 5, kind: output, shape index: {}]  }
   0x1   :  { %11 = vsyncpa [#allocation7], 0 }
   0x2   :  { %12 = vsyncpa [#allocation5], 0  ;;  %s770_s18 = smov [#allocation6]   ;;  %s676_s22 = scalar_lea.hbm %s869_s1, 4096 }
   0x3   :  { %s28_s19 = sshll.u32 %s770_s18, 4  ;;  %p677_p0 = scmp.ne.s32.totalorder %s869_s1, %s676_s22  ;;  %s29_s19 = int_to_ptr.vmem [resolvable:$true] %s28_s19 }
   0x4   :  { %p680_p1 = scmp.lt.u32.totalorder %s676_s22, %s869_s1 }
   0x6   :  { %p682_p2 = pnand %p680_p1, %p677_p0 }
   0x8   :  { %685 = shalt.err (!%p682_p2)
}
   0x9   :  { %s686_s27 = scalar_lea.vmem %s29_s19, 4096  ;;  %p691_p4 = scmp.lt.s32.totalorder %s29_s19, %s29_s19 }
   0xa   :  { %p687_p3 = scmp.ne.s32.totalorder %s29_s19, %s686_s27  ;;  %p692_p5 = scmp.lt.s32.totalorder %s686_s27, %s686_s27 }
   0xc   :  { %p693_p6 = por %p692_p5, %p691_p4 }
   0xe   :  { %p694_p7 = pnand %p693_p6, %p687_p3 }
  0x10   :  { %697 = shalt.err (!%p694_p7)
}
  0x11   :  { %s771_s28 = smov 128   ;;  %s772_s29 = smov 8  }
  0x12   :  { %34 = dma.hbm_to_vmem [thread:$0]  %s869_s1, 4096, %s29_s19, [#allocation7], %s771_s28, %s771_s28, %s772_s29  }
  0x13   :  { %s773_s7 = smov [#allocation3]   ;;  %s774_s9 = smov [#allocation8]  }
  0x14   :  { %s19_s8 = sshll.u32 %s773_s7, 4  ;;  %s42_s10 = sshll.u32 %s774_s9, 4  ;;  %s20_s8 = int_to_ptr.vmem [resolvable:$true] %s19_s8  ;;  %s43_s10 = int_to_ptr.vmem [resolvable:$true] %s42_s10 }
  0x15   :  { %s698_s13 = scalar_lea.hbm %s868_s0, 128 }
  0x16   :  { %p699_p8 = scmp.ne.s32.totalorder %s868_s0, %s698_s13  ;;  %p702_p9 = scmp.lt.u32.totalorder %s698_s13, %s868_s0 }
  0x18   :  { %p704_p10 = pnand %p702_p9, %p699_p8 }
  0x1a   :  { %707 = shalt.err (!%p704_p10)
}
  0x1b   :  { %s708_s1 = scalar_lea.vmem %s20_s8, 128  ;;  %p713_p12 = scmp.lt.s32.totalorder %s20_s8, %s20_s8 }
  0x1c   :  { %p709_p11 = scmp.ne.s32.totalorder %s20_s8, %s708_s1  ;;  %p714_p13 = scmp.lt.s32.totalorder %s708_s1, %s708_s1 }
  0x1e   :  { %p715_p0 = por %p714_p13, %p713_p12 }
  0x20   :  { %p716_p1 = pnand %p715_p0, %p709_p11 }
  0x22   :  { %719 = shalt.err (!%p716_p1)
}
  0x23   :  { %22 = dma.hbm_to_vmem [thread:$0]  %s868_s0, 128, %s20_s8, [#allocation4]  }
  0x24   :  { %s720_s22 = scalar_lea.hbm %s871_s3, 2048 }
  0x25   :  { %p721_p2 = scmp.ne.s32.totalorder %s871_s3, %s720_s22  ;;  %p724_p3 = scmp.lt.u32.totalorder %s720_s22, %s871_s3 }
  0x27   :  { %p726_p4 = pnand %p724_p3, %p721_p2 }
  0x29   :  { %729 = shalt.err (!%p726_p4)
}
  0x2a   :  { %s730_s27 = scalar_lea.vmem %s43_s10, 2048  ;;  %p735_p6 = scmp.lt.s32.totalorder %s43_s10, %s43_s10 }
  0x2b   :  { %p731_p5 = scmp.ne.s32.totalorder %s43_s10, %s730_s27  ;;  %p736_p7 = scmp.lt.s32.totalorder %s730_s27, %s730_s27 }
  0x2d   :  { %p737_p8 = por %p736_p7, %p735_p6 }
  0x2f   :  { %p738_p9 = pnand %p737_p8, %p731_p5 }
  0x31   :  { %741 = shalt.err (!%p738_p9)
}
  0x32   :  { %s775_s0 = smov 64   ;;  %s776_s28 = smov 4  }
  0x33   :  { %48 = dma.hbm_to_vmem [thread:$0]  %s871_s3, 2048, %s43_s10, [#allocation7], %s775_s0, %s775_s0, %s776_s28  }
  0x34   :  { %764 = dma.done.wait [#allocation4], 128  }
  0x35   :  { %765 = vsyncadd [#allocation4], 4294967168 }
  0x36   :  { %766 = dma.done.wait [#allocation7], 6144  }
  0x37   :  { %767 = vsyncadd [#allocation7], 4294961152  ;;  %v610_v0 = vld [vmem:[#allocation6 + $0x4] ss:$8 sps:$4 sm:$0xff]   ;;  %v612_v1 = vld [vmem:[#allocation6] ss:$8 sps:$4 sm:$0xff]   ;;  %v321_v51 = vlaneseq }
  0x38   :  { %269 = vmatprep.subr.bf16.mxu0 %v610_v0  ;;  %v613_v2 = vld [vmem:[#allocation6 + $0x14] ss:$8 sps:$4 sm:$0xff]   ;;  %v615_v3 = vld [vmem:[#allocation6 + $0x10] ss:$8 sps:$4 sm:$0xff]   ;;  %v616_v4 = vld [vmem:[#allocation6 + $0x24] ss:$8 sps:$4 sm:$0xff]  }
  0x39   :  { %270 = vmatpush1.bf16.msra.mxu0 %v612_v1  ;;  %v618_v5 = vld [vmem:[#allocation6 + $0x20] ss:$8 sps:$4 sm:$0xff]   ;;  %v619_v6 = vld [vmem:[#allocation6 + $0x34] ss:$8 sps:$4 sm:$0xff]   ;;  %v621_v7 = vld [vmem:[#allocation6 + $0x30] ss:$8 sps:$4 sm:$0xff]  }
  0x3a   :  { %271 = vmatprep.subr.bf16.mxu0 %v613_v2  ;;  %v622_v8 = vld [vmem:[#allocation6 + $0x44] ss:$8 sps:$4 sm:$0xff]   ;;  %v624_v9 = vld [vmem:[#allocation6 + $0x40] ss:$8 sps:$4 sm:$0xff]   ;;  %v625_v10 = vld [vmem:[#allocation6 + $0x54] ss:$8 sps:$4 sm:$0xff]  }
  0x3b   :  { %v627_v11 = vld [vmem:[#allocation6 + $0x50] ss:$8 sps:$4 sm:$0xff]   ;;  %v628_v12 = vld [vmem:[#allocation6 + $0x64] ss:$8 sps:$4 sm:$0xff]   ;;  %v630_v13 = vld [vmem:[#allocation6 + $0x60] ss:$8 sps:$4 sm:$0xff]  }
  0x3c   :  { %v844_v14 = vld [vmem:[#allocation3] sm:$0xff]  ;;  %v660_v17 = vld [vmem:[#allocation8 + $0x40] sm:$0xff]   ;;  %v662_v19 = vld [vmem:[#allocation8 + $0x48] sm:$0xff]   ;;  %v322_v52 = vshrl.u32 %v321_v51, 7 }
  0x3d   :  { %272 = vmatpush1.bf16.msra.mxu0 %v615_v3  ;;  %v631_v15 = vld [vmem:[#allocation6 + $0x74] ss:$8 sps:$4 sm:$0xff]   ;;  %v530_v16 = vcombine.high %v844_v14, %v844_v14  ;;  %v661_v18 = vld [vmem:[#allocation8] sm:$0xff]   ;;  %v633_v20 = vld [vmem:[#allocation6 + $0x70] ss:$8 sps:$4 sm:$0xff]   ;;  %580 = vmatprep.subr.bf16.mxu1 %v660_v17  ;;  %v529_v46 = vcombine.low %v844_v14, %v844_v14 }
  0x3e   :  { %273 = vmatprep.subr.bf16.mxu0 %v616_v4  ;;  %581 = vmatpush3.bf16.msra.mxu1 %v661_v18  ;;  %v663_v21 = vld [vmem:[#allocation8 + $0x8] sm:$0xff]   ;;  %v664_v22 = vld [vmem:[#allocation8 + $0x50] sm:$0xff]   ;;  %v666_v27 = vld [vmem:[#allocation8 + $0x58] sm:$0xff]   ;;  %v323_v53 = vsub.s32 0, %v322_v52  ;;  %v327_v55 = vsub.s32 1, %v322_v52 }
  0x3f   :  { %301 = vmatprep.mubr.bf16.mxu0 %v530_v16  ;;  %582 = vmatprep.subr.bf16.mxu1 %v662_v19  ;;  %v634_v23 = vld [vmem:[#allocation6 + $0x84] ss:$8 sps:$4 sm:$0xff]   ;;  %v636_v24 = vld [vmem:[#allocation6 + $0x80] ss:$8 sps:$4 sm:$0xff]   ;;  %v637_v25 = vld [vmem:[#allocation6 + $0x94] ss:$8 sps:$4 sm:$0xff]  }
  0x40   :  { %v665_v26 = vld [vmem:[#allocation8 + $0x10] sm:$0xff]   ;;  %v667_v28 = vld [vmem:[#allocation8 + $0x18] sm:$0xff]   ;;  %v668_v30 = vld [vmem:[#allocation8 + $0x60] sm:$0xff]  }
  0x41   :  { %274 = vmatpush1.bf16.msra.mxu0 %v618_v5  ;;  %v639_v29 = vld [vmem:[#allocation6 + $0x90] ss:$8 sps:$4 sm:$0xff]   ;;  %v640_v31 = vld [vmem:[#allocation6 + $0xa4] ss:$8 sps:$4 sm:$0xff]   ;;  %v642_v33 = vld [vmem:[#allocation6 + $0xa0] ss:$8 sps:$4 sm:$0xff]  }
  0x42   :  { %275 = vmatprep.subr.bf16.mxu0 %v619_v6  ;;  %583 = vmatpush3.bf16.msra.mxu1 %v663_v21  ;;  %v669_v32 = vld [vmem:[#allocation8 + $0x20] sm:$0xff]   ;;  %v670_v34 = vld [vmem:[#allocation8 + $0x68] sm:$0xff]   ;;  %v643_v35 = vld [vmem:[#allocation6 + $0xb4] ss:$8 sps:$4 sm:$0xff]  }
  0x43   :  { %584 = vmatprep.subr.bf16.mxu1 %v664_v22  ;;  %v671_v36 = vld [vmem:[#allocation8 + $0x28] sm:$0xff]   ;;  %v645_v37 = vld [vmem:[#allocation6 + $0xb0] ss:$8 sps:$4 sm:$0xff]   ;;  %v649_v40 = vld [vmem:[#allocation6 + $0xd4] ss:$8 sps:$4 sm:$0xff]  }
  0x44   :  { %v646_v38 = vld [vmem:[#allocation6 + $0xc4] ss:$8 sps:$4 sm:$0xff]   ;;  %v648_v39 = vld [vmem:[#allocation6 + $0xc0] ss:$8 sps:$4 sm:$0xff]   ;;  %v651_v41 = vld [vmem:[#allocation6 + $0xd0] ss:$8 sps:$4 sm:$0xff]  }
  0x45   :  { %276 = vmatpush1.bf16.msra.mxu0 %v621_v7  ;;  %v652_v42 = vld [vmem:[#allocation6 + $0xe4] ss:$8 sps:$4 sm:$0xff]   ;;  %v654_v43 = vld [vmem:[#allocation6 + $0xe0] ss:$8 sps:$4 sm:$0xff]   ;;  %v655_v44 = vld [vmem:[#allocation6 + $0xf4] ss:$8 sps:$4 sm:$0xff]  }
  0x46   :  { %277 = vmatprep.subr.bf16.mxu0 %v622_v8  ;;  %585 = vmatpush3.bf16.msra.mxu1 %v665_v26  ;;  %v657_v45 = vld [vmem:[#allocation6 + $0xf0] ss:$8 sps:$4 sm:$0xff]  }
  0x47   :  { %586 = vmatprep.subr.bf16.mxu1 %v666_v27  ;;  %v672_v47 = vld [vmem:[#allocation8 + $0x70] sm:$0xff]   ;;  %v674_v49 = vld [vmem:[#allocation8 + $0x78] sm:$0xff]  }
  0x48   :  { %v673_v48 = vld [vmem:[#allocation8 + $0x30] sm:$0xff]   ;;  %v675_v50 = vld [vmem:[#allocation8 + $0x38] sm:$0xff]  }
  0x49   :  { %278 = vmatpush1.bf16.msra.mxu0 %v624_v9  ;;  %v319_v54 = vld [vmem:[%s870_s2] sm:$0x3]  ;;  %s777_s2 = smov [#allocation9]  }
  0x4a   :  { %279 = vmatprep.subr.bf16.mxu0 %v625_v10  ;;  %587 = vmatpush3.bf16.msra.mxu1 %v667_v28  ;;  %v324_v56 = vrot.slane %v319_v54, %v323_v53  ;;  %v328_v57 = vrot.slane %v319_v54, %v327_v55  ;;  %v563_v5 = vld [vmem:[%s872_s4] ss:$0 sm:$0xff]  ;;  %s519_s9 = sshll.u32 %s777_s2, 4  ;;  %s520_s9 = int_to_ptr.vmem [resolvable:$true] %s519_s9 }
  0x4b   :  { %588 = vmatprep.subr.bf16.mxu1 %v668_v30  ;;  %s742_s10 = scalar_lea.vmem %s520_s9, 128  ;;  %p747_p11 = scmp.lt.s32.totalorder %s520_s9, %s520_s9 }
  0x4c   :  { %p743_p10 = scmp.ne.s32.totalorder %s520_s9, %s742_s10  ;;  %p748_p12 = scmp.lt.s32.totalorder %s742_s10, %s742_s10 }
  0x4d   :  { %280 = vmatpush1.bf16.msra.mxu0 %v627_v11 }
  0x4e   :  { %281 = vmatprep.subr.bf16.mxu0 %v628_v12  ;;  %589 = vmatpush3.bf16.msra.mxu1 %v669_v32  ;;  %p749_p13 = por %p748_p12, %p747_p11 }
  0x4f   :  { %590 = vmatprep.subr.bf16.mxu1 %v670_v34 }
  0x50   :  { %p750_p0 = pnand %p749_p13, %p743_p10 }
  0x51   :  { %282 = vmatpush1.bf16.msra.mxu0 %v630_v13 }
  0x52   :  { %283 = vmatprep.subr.bf16.mxu0 %v631_v15  ;;  %591 = vmatpush3.bf16.msra.mxu1 %v671_v36 }
  0x53   :  { %592 = vmatprep.subr.bf16.mxu1 %v672_v47 }
  0x55   :  { %284 = vmatpush1.bf16.msra.mxu0 %v633_v20 }
  0x56   :  { %285 = vmatprep.subr.bf16.mxu0 %v634_v23  ;;  %593 = vmatpush3.bf16.msra.mxu1 %v673_v48 }
  0x57   :  { %594 = vmatprep.subr.bf16.mxu1 %v674_v49 }
  0x59   :  { %286 = vmatpush1.bf16.msra.mxu0 %v636_v24 }
  0x5a   :  { %287 = vmatprep.subr.bf16.mxu0 %v637_v25  ;;  %595 = vmatpush3.bf16.msra.mxu1 %v675_v50 }
  0x5d   :  { %288 = vmatpush1.bf16.msra.mxu0 %v639_v29 }
  0x5e   :  { %289 = vmatprep.subr.bf16.mxu0 %v640_v31 }
  0x61   :  { %290 = vmatpush1.bf16.msra.mxu0 %v642_v33 }
  0x62   :  { %291 = vmatprep.subr.bf16.mxu0 %v643_v35 }
  0x65   :  { %292 = vmatpush1.bf16.msra.mxu0 %v645_v37 }
  0x66   :  { %293 = vmatprep.subr.bf16.mxu0 %v646_v38 }
  0x69   :  { %294 = vmatpush1.bf16.msra.mxu0 %v648_v39 }
  0x6a   :  { %295 = vmatprep.subr.bf16.mxu0 %v649_v40 }
  0x6d   :  { %296 = vmatpush1.bf16.msra.mxu0 %v651_v41 }
  0x6e   :  { %297 = vmatprep.subr.bf16.mxu0 %v652_v42 }
  0x71   :  { %298 = vmatpush1.bf16.msra.mxu0 %v654_v43 }
  0x72   :  { %299 = vmatprep.subr.bf16.mxu0 %v655_v44 }
  0x75   :  { %300 = vmatpush1.bf16.msra.mxu0 %v657_v45 }
  0x78   :  { %302 = vmatmul.mubr.bf16.vlgmr.msra.gmra.mrb[0].mxu0 %v529_v46 }
 0x14b   :  { %v303_v58 = vpop.f32.mrb[0].mxu0 }
 0x14c   :  { %v331_v59 = vadd.f32 %v324_v56, %v303_v58  ;;  %v305_v60 = vpop.f32.mrb[1].mxu0 }
 0x14d   :  { %v332_v61 = vadd.f32 %v328_v57, %v305_v60  ;;  %v307_v62 = vpop.f32.mrb[2].mxu0 }
 0x14e   :  { %v333_v63 = vmax.f32 %v331_v59, 0.0  ;;  %v308_v0 = vpop.f32.mrb[3].mxu0 }
 0x14f   :  { %v334_v1 = vmax.f32 %v332_v61, 0.0 }
 0x150   :  { %v335_v3 = vpack.c.bf16 %v333_v63, %v333_v63 }
 0x151   :  { %v336_v2 = vpack.c.bf16 %v334_v1, %v334_v1 }
 0x153   :  { %504 = vmatprep.mubr.bf16.mxu1 %v336_v2 }
 0x154   :  { %505 = vmatmul.mubr.bf16.vlgmr.msra.gmra.mrb[0].mxu1 %v335_v3 }
 0x227   :  { %v596_v4 = vpop.f32.mrb[0].mxu1 }
 0x228   :  { %v597_v6 = vpop.f32.mrb[1].mxu1 }
 0x229   :  { %v598_v7 = vadd.f32 %v597_v6, %v596_v4  ;;  %v599_v8 = vpop.f32.mrb[2].mxu1 }
 0x22a   :  { %v600_v9 = vpop.f32.mrb[3].mxu1 }
 0x22b   :  { %v507_v10 = vadd.f32 %v598_v7, %v563_v5 }
 0x22d   :  { %512 = vst [vmem:[#allocation9] sm:$0xff] %v507_v10 }
 0x22e   :  { %753 = shalt.err (!%p750_p0)
}
 0x22f   :  { %s754_s4 = scalar_lea.hbm %s873_s5, 128 }
 0x230   :  { %p755_p1 = scmp.ne.s32.totalorder %s873_s5, %s754_s4  ;;  %p758_p2 = scmp.lt.u32.totalorder %s754_s4, %s873_s5 }
 0x232   :  { %p760_p3 = pnand %p758_p2, %p755_p1 }
 0x234   :  { %763 = shalt.err (!%p760_p3)
}
 0x235   :  { %522 = dma.vmem_to_hbm [thread:$0]  %s520_s9, 128, %s873_s5, [#allocation5]  }
 0x236   :  { %768 = dma.done.wait [#allocation5], 128  }
 0x237   :  { %769 = vsyncadd [#allocation5], 4294967168 }
 0x238   :  { %526 = vsyncpa [#allocation4], 1 }
 0x239   :  { %527 = vsyncpa [#allocation7], 1 }
 0x23a   :  { %528 = vsyncpa [#allocation5], 1 }

</bundles_post_ra>
